<compile_context>
chip_gen: v5e
topology: v5e:2x2
jax: 0.10.0
libtpu: 0.0.40
codegen_flags: <defaults>
</compile_context>

<pallas_src>
import functools

import numpy as np

import jax
import jax.numpy as jnp
from jax import lax
from jax.experimental import pallas as pl
from jax.experimental.pallas import tpu as pltpu

EPS = 1e-5
MOMENTUM = 0.1

# Leading "parallel" axis of the stats grid: 2 TensorCores on v7x use both HBM
# paths; on single-TC v5e/v6e the extra shard is just a few masked-out steps.
NUM_STATS_SHARDS = 2

# 40 MiB scoped VMEM: leaves headroom on v7x (64 MiB physical), far below the
# 128 MiB on v5e/v6e, and above v5e's 16 MiB default so the chosen tiles really
# run double-buffered.
VMEM_LIMIT_BYTES = 40 * 1024 * 1024

# If x (as f32) is at most this big, use the single-call VMEM-resident path
# (conservative so input + f32 copy + centered copy + output fit on all gens).
RESIDENT_LIMIT_BYTES = 4 * 1024 * 1024


def _grade_slices(channels, depth):
    sizes = tuple(channels ** (d + 1) for d in range(depth))
    offsets, off = [], 0
    for s in sizes:
        offsets.append(off)
        off += s
    return tuple(offsets), sizes, off


def _round_up(v, m):
    return ((v + m - 1) // m) * m


def _grade_maps(sizes):
    grade_id = np.concatenate(
        [np.full((s,), g, np.int32) for g, s in enumerate(sizes)])        # (C,)
    onehot = (grade_id[None, :] ==
              np.arange(len(sizes))[:, None]).astype(np.float32)          # (G, C)
    return grade_id, onehot


# ---------------------------------------------------------------------------
# Resident path: single call, x stays in VMEM, stats + apply fused (2N traffic)
# ---------------------------------------------------------------------------
def _resident_kernel(x_ref, w_ref, b_ref, oh_ref, inv_n_ref, inv_nm1_ref, o_ref):
    x = x_ref[...].astype(jnp.float32)                         # (B, C)
    oh = oh_ref[...]                                           # (G, C) 0/1 grade one-hot

    # Per-grade batch mean (two-pass variance: x is VMEM-resident, re-reads are cheap).
    col_sum = jnp.sum(x, axis=0, keepdims=True)                # (1, C)
    sum_g = jnp.sum(col_sum * oh, axis=1, keepdims=True)       # (G, 1)
    mean_g = sum_g * inv_n_ref[...]                            # (G, 1) batch mean
    mean_c = jnp.sum(mean_g * oh, axis=0, keepdims=True)       # (1, C) per-column mean
    xc = x - mean_c
    ss_col = jnp.sum(xc * xc, axis=0, keepdims=True)           # (1, C)
    ss_g = jnp.sum(ss_col * oh, axis=1, keepdims=True)         # (G, 1)
    var_g = ss_g * inv_nm1_ref[...]                            # unbiased batch var

    # Momentum-mixed "updated running stats" used for normalization.
    run_mean = MOMENTUM * mean_g                               # (1-m)*0 + m*bm
    run_var = (1.0 - MOMENTUM) + MOMENTUM * var_g              # (1-m)*1 + m*bv

    scale_g = w_ref[...] * lax.rsqrt(run_var + EPS)            # (G, 1)
    shift_g = b_ref[...] - run_mean * scale_g                  # (G, 1)
    scale_c = jnp.sum(scale_g * oh, axis=0, keepdims=True)     # (1, C)
    shift_c = jnp.sum(shift_g * oh, axis=0, keepdims=True)     # (1, C)

    o_ref[...] = (x * scale_c + shift_c).astype(o_ref.dtype)


# ---------------------------------------------------------------------------
# Tiled path, pass 1: per-shard, per-column partial sum / sumsq
# ---------------------------------------------------------------------------
def _stats_kernel(x_ref, sum_ref, sq_ref, *, batch_tile, n_rows, tiles_per_shard):
    c = pl.program_id(0)        # shard ("parallel": one per TensorCore on v7x)
    i = pl.program_id(1)        # batch-tile within the shard ("arbitrary": reduction)

    @pl.when(i == 0)
    def _():
        sum_ref[...] = jnp.zeros_like(sum_ref)
        sq_ref[...] = jnp.zeros_like(sq_ref)

    tile_idx = c * tiles_per_shard + i
    row_start = tile_idx * batch_tile

    # Accumulate 8-row chunks with plain VALU adds into the (8, C) partials
    # (no cross-sublane reduction in the hot loop; collapse happens in the wrapper).
    @pl.loop(0, batch_tile // 8)
    def _(k):
        r0 = pl.multiple_of(k * 8, 8)
        xs = x_ref[pl.ds(r0, 8), :].astype(jnp.float32)                  # (8, C)
        rows = row_start + r0 + lax.broadcasted_iota(jnp.int32, (8, 1), 0)
        # Mask ragged last tile / out-of-range shard tiles (select, not mul,
        # so garbage rows — possibly NaN — never poison the sums).
        xs = jnp.where(rows < n_rows, xs, 0.0)
        sum_ref[...] += xs
        sq_ref[...] += xs * xs


# ---------------------------------------------------------------------------
# Tiled path, pass 2: lane-dense fused normalize + affine over whole rows
# ---------------------------------------------------------------------------
def _apply_kernel(x_ref, scale_ref, shift_ref, o_ref):
    x = x_ref[...].astype(jnp.float32)
    o_ref[...] = (x * scale_ref[...] + shift_ref[...]).astype(o_ref.dtype)


def graded_normalization(x, weight, bias, *, channels, depth,
                         stats_tile=None, apply_tile=None, force_tiled=False):
    B, C = x.shape
    _, sizes, total = _grade_slices(channels, depth)
    assert total == C, "channel dim must equal sum of channels**d, d=1..depth"

    grade_id_np, onehot_np = _grade_maps(sizes)
    w32 = weight.astype(jnp.float32).reshape(depth, 1)
    b32 = bias.astype(jnp.float32).reshape(depth, 1)

    n_g = np.array([B * s for s in sizes], np.float32)          # elements per grade
    inv_n = (1.0 / n_g).reshape(depth, 1)
    inv_nm1 = (1.0 / np.maximum(n_g - 1.0, 1.0)).reshape(depth, 1)

    # -------------------- resident single-call path --------------------
    if not force_tiled and B * C * 4 <= RESIDENT_LIMIT_BYTES:
        return pl.pallas_call(
            _resident_kernel,
            out_shape=jax.ShapeDtypeStruct((B, C), x.dtype),
            in_specs=[pl.BlockSpec(memory_space=pltpu.MemorySpace.VMEM)] * 6,
            out_specs=pl.BlockSpec(memory_space=pltpu.MemorySpace.VMEM),
            compiler_params=pltpu.CompilerParams(vmem_limit_bytes=VMEM_LIMIT_BYTES),
        )(x, w32, b32, jnp.asarray(onehot_np),
          jnp.asarray(inv_n), jnp.asarray(inv_nm1))

    # -------------------- tiled two-pass path --------------------
    row_bytes = C * x.dtype.itemsize
    if stats_tile is None:
        # Stats pass only double-buffers x (outputs are tiny) -> ~8 MiB tiles.
        stats_tile = max(8, ((8 * 1024 * 1024 // row_bytes) // 8) * 8)
        stats_tile = min(stats_tile,
                         max(8, _round_up(-(-B // NUM_STATS_SHARDS), 8)))
    if apply_tile is None:
        # Apply pass double-buffers x and out (4 buffers) -> ~6 MiB tiles
        # keeps the working set ~25 MiB, safe under the 40 MiB limit on v7x.
        apply_tile = max(8, ((6 * 1024 * 1024 // row_bytes) // 8) * 8)
        apply_tile = min(apply_tile, max(8, _round_up(B, 8)))
    assert stats_tile % 8 == 0 and apply_tile % 8 == 0
    # TODO(synk): for a bf16 input path, bump the sublane alignment above from 8 to 16.

    total_tiles = -(-B // stats_tile)
    tiles_per_shard = -(-total_tiles // NUM_STATS_SHARDS)
    last_block = total_tiles - 1

    stats_kernel = functools.partial(
        _stats_kernel, batch_tile=stats_tile, n_rows=B,
        tiles_per_shard=tiles_per_shard)

    part_sum, part_sq = pl.pallas_call(
        stats_kernel,
        out_shape=(jax.ShapeDtypeStruct((NUM_STATS_SHARDS * 8, C), jnp.float32),
                   jax.ShapeDtypeStruct((NUM_STATS_SHARDS * 8, C), jnp.float32)),
        grid=(NUM_STATS_SHARDS, tiles_per_shard),
        in_specs=[pl.BlockSpec(
            (stats_tile, C),
            # Clamp out-of-range tiles of the last shard to the last real block;
            # their rows are masked out inside the kernel.
            lambda c, i: (jnp.minimum(c * tiles_per_shard + i, last_block), 0))],
        out_specs=(pl.BlockSpec((8, C), lambda c, i: (c, 0)),
                   pl.BlockSpec((8, C), lambda c, i: (c, 0))),
        compiler_params=pltpu.CompilerParams(
            dimension_semantics=("parallel", "arbitrary"),
            vmem_limit_bytes=VMEM_LIMIT_BYTES),
    )(x)

    # Tiny per-grade epilogue in plain XLA (kept out of the kernel).
    # NOTE: sumsq - sum^2/n in f32 can cancel if |mean| >> std at very large n;
    # the resident path uses a two-pass (centered) variance instead.
    oh = jnp.asarray(onehot_np)                        # (G, C)
    col_sum = jnp.sum(part_sum, axis=0)                # (C,)
    col_sq = jnp.sum(part_sq, axis=0)                  # (C,)
    sum_g = oh @ col_sum                               # (G,)
    sq_g = oh @ col_sq                                 # (G,)
    n_vec = jnp.asarray(n_g)
    batch_mean = sum_g / n_vec
    batch_var = (sq_g - sum_g * sum_g / n_vec) / jnp.maximum(n_vec - 1.0, 1.0)
    run_mean = MOMENTUM * batch_mean
    run_var = (1.0 - MOMENTUM) + MOMENTUM * batch_var
    scale_g = w32[:, 0] * lax.rsqrt(run_var + EPS)
    shift_g = b32[:, 0] - run_mean * scale_g
    gid = jnp.asarray(grade_id_np)
    scale_vec = scale_g[gid][None, :]                  # (1, C)
    shift_vec = shift_g[gid][None, :]                  # (1, C)

    num_apply_tiles = -(-B // apply_tile)
    out = pl.pallas_call(
        _apply_kernel,
        out_shape=jax.ShapeDtypeStruct((B, C), x.dtype),
        grid=(num_apply_tiles,),
        in_specs=[pl.BlockSpec((apply_tile, C), lambda i: (i, 0)),
                  # Constant block index -> fetched once, not re-DMA'd per step.
                  pl.BlockSpec((1, C), lambda i: (0, 0)),
                  pl.BlockSpec((1, C), lambda i: (0, 0))],
        out_specs=pl.BlockSpec((apply_tile, C), lambda i: (i, 0)),
        compiler_params=pltpu.CompilerParams(
            dimension_semantics=("parallel",),          # both TCs on v7x
            vmem_limit_bytes=VMEM_LIMIT_BYTES),
    )(x, scale_vec, shift_vec)
    return out


def graded_normalization_ref(x, weight, bias, *, channels, depth):
    # Pure-JAX reference mirroring the PyTorch forward, for validation.
    offsets, sizes, _ = _grade_slices(channels, depth)
    outs = []
    for g in range(depth):
        s, sz = offsets[g], sizes[g]
        xg = x[:, s:s + sz]
        n = xg.size
        batch_mean = jnp.mean(xg)
        batch_var = jnp.sum((xg - batch_mean) ** 2) / (n - 1)
        mean = MOMENTUM * batch_mean
        var = (1.0 - MOMENTUM) + MOMENTUM * batch_var
        y = (xg - mean) * lax.rsqrt(var + EPS)
        outs.append(y * weight[g] + bias[g])
    return jnp.concatenate(outs, axis=-1)


if __name__ == "__main__":
    channels, depth = 4, 3
    C_total = sum(channels ** (d + 1) for d in range(depth))   # 4 + 16 + 64 = 84

    key = jax.random.PRNGKey(0)
    kx1, kx2, kw, kb = jax.random.split(key, 4)
    # Module __init__ sets per-grade weight=1 / bias=0; use non-trivial values so
    # the folded affine path is exercised (reference uses the same values).
    weight = 1.0 + 0.1 * jax.random.normal(kw, (depth,), dtype=jnp.float32)
    bias = 0.1 * jax.random.normal(kb, (depth,), dtype=jnp.float32)

    # 1) Small input -> single-call VMEM-resident path.
    B1 = 16
    x1 = jax.random.normal(kx1, (B1, C_total), dtype=jnp.float32)
    out1 = jax.block_until_ready(
        graded_normalization(x1, weight, bias, channels=channels, depth=depth))
    ref1 = graded_normalization_ref(x1, weight, bias, channels=channels, depth=depth)
    assert out1.shape == (B1, C_total) and out1.dtype == x1.dtype
    err1 = float(jnp.max(jnp.abs(out1 - ref1)))
    assert jnp.allclose(out1, ref1, atol=1e-4, rtol=1e-4), err1

    # 2) Tiled two-pass path, forced at small shapes, with a ragged last batch
    #    tile (B=20, tile=8) to exercise the 2-shard stats grid and row masking.
    B2 = 20
    x2 = jax.random.normal(kx2, (B2, C_total), dtype=jnp.float32)
    out2 = jax.block_until_ready(
        graded_normalization(x2, weight, bias, channels=channels, depth=depth,
                             force_tiled=True, stats_tile=8, apply_tile=8))
    ref2 = graded_normalization_ref(x2, weight, bias, channels=channels, depth=depth)
    assert out2.shape == (B2, C_total) and out2.dtype == x2.dtype
    err2 = float(jnp.max(jnp.abs(out2 - ref2)))
    assert jnp.allclose(out2, ref2, atol=1e-4, rtol=1e-4), err2

    print("KERNEL_OK")
</pallas_src>

<mosaic_0001>
module attributes {stable_mosaic.version = 11 : i64} {
  func.func @_resident_kernel(%arg0: memref<16x84xf32, #tpu.memory_space<vmem>>, %arg1: memref<3x1xf32, #tpu.memory_space<vmem>>, %arg2: memref<3x1xf32, #tpu.memory_space<vmem>>, %arg3: memref<3x84xf32, #tpu.memory_space<vmem>>, %arg4: memref<3x1xf32, #tpu.memory_space<vmem>>, %arg5: memref<3x1xf32, #tpu.memory_space<vmem>>, %arg6: memref<16x84xf32, #tpu.memory_space<vmem>>) attributes {dimension_semantics = [], scalar_prefetch = 0 : i64, scratch_operands = 0 : i64, tpu.core_type = #tpu.core_type<tc>} {
    %c0 = arith.constant 0 : index
    %c0_0 = arith.constant 0 : index
    %0 = vector.load %arg0[%c0, %c0_0] : memref<16x84xf32, #tpu.memory_space<vmem>>, vector<16x84xf32>
    %c0_1 = arith.constant 0 : index
    %c0_2 = arith.constant 0 : index
    %1 = vector.load %arg3[%c0_1, %c0_2] : memref<3x84xf32, #tpu.memory_space<vmem>>, vector<3x84xf32>
    %cst = arith.constant dense<0.000000e+00> : vector<84xf32>
    %2 = vector.multi_reduction <add>, %0, %cst [0] : vector<16x84xf32> to vector<84xf32>
    %3 = vector.shape_cast %2 : vector<84xf32> to vector<1x84xf32>
    %4 = vector.broadcast %3 : vector<1x84xf32> to vector<3x84xf32>
    %5 = arith.mulf %4, %1 : vector<3x84xf32>
    %cst_3 = arith.constant dense<0.000000e+00> : vector<3xf32>
    %6 = vector.multi_reduction <add>, %5, %cst_3 [1] : vector<3x84xf32> to vector<3xf32>
    %7 = vector.shape_cast %6 : vector<3xf32> to vector<3x1xf32>
    %c0_4 = arith.constant 0 : index
    %c0_5 = arith.constant 0 : index
    %8 = vector.load %arg4[%c0_4, %c0_5] : memref<3x1xf32, #tpu.memory_space<vmem>>, vector<3x1xf32>
    %9 = arith.mulf %7, %8 : vector<3x1xf32>
    %10 = vector.broadcast %9 : vector<3x1xf32> to vector<3x84xf32>
    %11 = arith.mulf %10, %1 : vector<3x84xf32>
    %cst_6 = arith.constant dense<0.000000e+00> : vector<84xf32>
    %12 = vector.multi_reduction <add>, %11, %cst_6 [0] : vector<3x84xf32> to vector<84xf32>
    %13 = vector.shape_cast %12 : vector<84xf32> to vector<1x84xf32>
    %14 = vector.broadcast %13 : vector<1x84xf32> to vector<16x84xf32>
    %15 = arith.subf %0, %14 : vector<16x84xf32>
    %16 = arith.mulf %15, %15 : vector<16x84xf32>
    %cst_7 = arith.constant dense<0.000000e+00> : vector<84xf32>
    %17 = vector.multi_reduction <add>, %16, %cst_7 [0] : vector<16x84xf32> to vector<84xf32>
    %18 = vector.shape_cast %17 : vector<84xf32> to vector<1x84xf32>
    %19 = vector.broadcast %18 : vector<1x84xf32> to vector<3x84xf32>
    %20 = arith.mulf %19, %1 : vector<3x84xf32>
    %cst_8 = arith.constant dense<0.000000e+00> : vector<3xf32>
    %21 = vector.multi_reduction <add>, %20, %cst_8 [1] : vector<3x84xf32> to vector<3xf32>
    %22 = vector.shape_cast %21 : vector<3xf32> to vector<3x1xf32>
    %c0_9 = arith.constant 0 : index
    %c0_10 = arith.constant 0 : index
    %23 = vector.load %arg5[%c0_9, %c0_10] : memref<3x1xf32, #tpu.memory_space<vmem>>, vector<3x1xf32>
    %24 = arith.mulf %22, %23 : vector<3x1xf32>
    %cst_11 = arith.constant 1.000000e-01 : f32
    %25 = vector.broadcast %cst_11 : f32 to vector<3x1xf32>
    %26 = arith.mulf %25, %9 : vector<3x1xf32>
    %cst_12 = arith.constant 1.000000e-01 : f32
    %27 = vector.broadcast %cst_12 : f32 to vector<3x1xf32>
    %28 = arith.mulf %27, %24 : vector<3x1xf32>
    %cst_13 = arith.constant 0.899999976 : f32
    %29 = vector.broadcast %cst_13 : f32 to vector<3x1xf32>
    %30 = arith.addf %29, %28 : vector<3x1xf32>
    %c0_14 = arith.constant 0 : index
    %c0_15 = arith.constant 0 : index
    %31 = vector.load %arg1[%c0_14, %c0_15] : memref<3x1xf32, #tpu.memory_space<vmem>>, vector<3x1xf32>
    %cst_16 = arith.constant 9.99999974E-6 : f32
    %32 = vector.broadcast %cst_16 : f32 to vector<3x1xf32>
    %33 = arith.addf %30, %32 : vector<3x1xf32>
    %34 = math.rsqrt %33 : vector<3x1xf32>
    %35 = arith.mulf %31, %34 : vector<3x1xf32>
    %c0_17 = arith.constant 0 : index
    %c0_18 = arith.constant 0 : index
    %36 = vector.load %arg2[%c0_17, %c0_18] : memref<3x1xf32, #tpu.memory_space<vmem>>, vector<3x1xf32>
    %37 = arith.mulf %26, %35 : vector<3x1xf32>
    %38 = arith.subf %36, %37 : vector<3x1xf32>
    %39 = vector.broadcast %35 : vector<3x1xf32> to vector<3x84xf32>
    %40 = arith.mulf %39, %1 : vector<3x84xf32>
    %cst_19 = arith.constant dense<0.000000e+00> : vector<84xf32>
    %41 = vector.multi_reduction <add>, %40, %cst_19 [0] : vector<3x84xf32> to vector<84xf32>
    %42 = vector.shape_cast %41 : vector<84xf32> to vector<1x84xf32>
    %43 = vector.broadcast %38 : vector<3x1xf32> to vector<3x84xf32>
    %44 = arith.mulf %43, %1 : vector<3x84xf32>
    %cst_20 = arith.constant dense<0.000000e+00> : vector<84xf32>
    %45 = vector.multi_reduction <add>, %44, %cst_20 [0] : vector<3x84xf32> to vector<84xf32>
    %46 = vector.shape_cast %45 : vector<84xf32> to vector<1x84xf32>
    %47 = vector.broadcast %42 : vector<1x84xf32> to vector<16x84xf32>
    %48 = arith.mulf %0, %47 : vector<16x84xf32>
    %49 = vector.broadcast %46 : vector<1x84xf32> to vector<16x84xf32>
    %50 = arith.addf %48, %49 : vector<16x84xf32>
    %c0_21 = arith.constant 0 : index
    %c0_22 = arith.constant 0 : index
    %51 = vector.load %arg6[%c0_21, %c0_22] : memref<16x84xf32, #tpu.memory_space<vmem>>, vector<16x84xf32>
    tpu.vector_store %arg6[%c0_21, %c0_22], %50 {strides = array<i32>} : memref<16x84xf32, #tpu.memory_space<vmem>>, vector<16x84xf32>,
    return
  }
}

</mosaic_0001>

<bundles_post_ra>
// kernel: tpu_custom_call.1
= control target key start
LH: loop header
LB: loop body
LE: loop exit
PB: predicated region body
PF: predicated region fallthrough
CT: control target
= control target key end

     0   :  { %11 = vsyncpa [#allocation3], 0  ;;  %s319_s0 = inlined_call_operand.hbm [shape: f32[16,84], index: 0, kind: input, shape index: {}]   ;;  %s320_s1 = inlined_call_operand.vmem [shape: f32[3,1], index: 1, kind: input, shape index: {}]   ;;  %s321_s2 = inlined_call_operand.vmem [shape: f32[3,1], index: 2, kind: input, shape index: {}]   ;;  %s322_s3 = inlined_call_operand.vmem [shape: f32[3,84], index: 3, kind: input, shape index: {}]   ;;  %s323_s4 = inlined_call_operand.vmem [shape: f32[3,1], index: 4, kind: input, shape index: {}]   ;;  %s324_s5 = inlined_call_operand.vmem [shape: f32[3,1], index: 5, kind: input, shape index: {}]   ;;  %s325_s6 = inlined_call_operand.hbm [shape: f32[16,84], index: 6, kind: output, shape index: {}]  }
   0x1   :  { %12 = vsyncpa [#allocation4], 0  ;;  %s17_s23 = sshll.u32 %s319_s0, 4  ;;  %s224_s24 = smov [#allocation2]   ;;  %s18_s23 = int_to_ptr.hbm [resolvable:$true] %s17_s23 }
   0x2   :  { %s19_s25 = sshll.u32 %s224_s24, 4  ;;  %s225_s26 = smov 128   ;;  %s20_s25 = int_to_ptr.vmem [resolvable:$true] %s19_s25 }
   0x3   :  { %s226_s27 = smov 8  }
   0x4   :  { %25 = dma.hbm_to_vmem [thread:$0]  %s18_s23, 256, %s20_s25, [#allocation3], %s225_s26, %s225_s26, %s226_s27  }
   0x5   :  { %220 = dma.done.wait [#allocation3], 256  }
   0x6   :  { %221 = vsyncadd [#allocation3], 4294967040  ;;  %vm43_vm0 = vcmask 687104   ;;  %v270_v0 = vld [vmem:[#allocation2] sm:$0xff]  ;;  %v272_v1 = vld [vmem:[#allocation2 + $0x8] sm:$0xff]  ;;  %vm54_vm1 = vcmask 681984  }
   0x7   :  { %v44_v2 = vsel %vm43_vm0, %v270_v0, 0.0  ;;  %v45_v3 = vsel %vm43_vm0, %v272_v1, 0.0  ;;  %v281_v10 = vld [vmem:[%s322_s3] sm:$0x7]  ;;  %v227_v14 = vmov 0   ;;  %s149_s12 = sshll.u32 %s325_s6, 4  ;;  %s150_s12 = int_to_ptr.hbm [resolvable:$true] %s149_s12 }
   0x8   :  { %v46_v4 = vadd.f32 %v45_v3, %v44_v2  ;;  %167 = vset.pattern.permute.xlu0 %v227_v14  ;;  %168 = vset.pattern.permute.xlu1 %v227_v14  ;;  %v58_v15 = vld [vmem:[%s323_s4] sm:$0x7] }
   0x9   :  { %169 = vset.pattern.permute.xlu2 %v227_v14  ;;  %v90_v42 = vld [vmem:[%s324_s5] sm:$0x7] }
   0xa   :  { %v47_v5 = vrot.slane %v46_v4, 4  ;;  %v95_v53 = vld [vmem:[%s320_s1] sm:$0x7]  ;;  %s228_s1 = smov [#allocation5]  }
   0xb   :  { %v108_v58 = vld [vmem:[%s321_s2] sm:$0x7]  ;;  %s147_s2 = sshll.u32 %s228_s1, 4  ;;  %s148_s2 = int_to_ptr.vmem [resolvable:$true] %s147_s2 }
   0xc   :  { %v48_v6 = vadd.f32 %v47_v5, %v46_v4 }
   0xe   :  { %v49_v7 = vrot.slane %v48_v6, 2 }
  0x10   :  { %v50_v8 = vadd.f32 %v49_v7, %v48_v6 }
  0x12   :  { %v51_v9 = vrot.slane %v50_v8, 1 }
  0x14   :  { %v52_v11 = vadd.f32 %v51_v9, %v50_v8 }
  0x16   :  { %v53_v12 = vmul.f32 %v52_v11, %v281_v10 }
  0x18   :  { %v55_v13 = vsel %vm54_vm1, %v53_v12, 0.0 }
  0x19   :  { %56 = vadd.xlane.f32.xlu0 %v55_v13 }
  0x8c   :  { %v57_v16 = vpop.xlane.xlu0 %56 }
  0x8d   :  { %v59_v17 = vmul.f32 %v58_v15, %v57_v16 }
  0x8f   :  { %62 = vperm.xlu0 %167, %v59_v17   ;;  %v92_v56 = vmul.f32 0.1, %v59_v17 }
 0x101   :  { %v63_v18 = vpop.permute.xlu0 %62 }
 0x102   :  { %v65_v19 = vmul.f32 %v63_v18, %v281_v10 }
 0x104   :  { %v66_v20 = vsel %vm54_vm1, %v65_v19, 0.0 }
 0x105   :  { %v67_v21 = vrot.slane %v66_v20, 4 }
 0x107   :  { %v68_v22 = vadd.f32 %v67_v21, %v66_v20 }
 0x109   :  { %v69_v23 = vrot.slane %v68_v22, 2 }
 0x10b   :  { %v70_v24 = vadd.f32 %v69_v23, %v68_v22 }
 0x10d   :  { %v71_v25 = vrot.slane %v70_v24, 1 }
 0x10f   :  { %v72_v26 = vadd.f32 %v71_v25, %v70_v24 }
 0x111   :  { %v73_v27 = vsub.f32 %v270_v0, %v72_v26  ;;  %v74_v28 = vsub.f32 %v272_v1, %v72_v26 }
 0x113   :  { %v75_v29 = vmul.f32 %v73_v27, %v73_v27  ;;  %v76_v30 = vmul.f32 %v74_v28, %v74_v28 }
 0x115   :  { %v77_v31 = vsel %vm43_vm0, %v75_v29, 0.0  ;;  %v78_v32 = vsel %vm43_vm0, %v76_v30, 0.0 }
 0x116   :  { %v79_v33 = vadd.f32 %v78_v32, %v77_v31 }
 0x118   :  { %v80_v34 = vrot.slane %v79_v33, 4 }
 0x11a   :  { %v81_v35 = vadd.f32 %v80_v34, %v79_v33 }
 0x11c   :  { %v82_v36 = vrot.slane %v81_v35, 2 }
 0x11e   :  { %v83_v37 = vadd.f32 %v82_v36, %v81_v35 }
 0x120   :  { %v84_v38 = vrot.slane %v83_v37, 1 }
 0x122   :  { %v85_v39 = vadd.f32 %v84_v38, %v83_v37 }
 0x124   :  { %v86_v40 = vmul.f32 %v85_v39, %v281_v10 }
 0x126   :  { %v87_v41 = vsel %vm54_vm1, %v86_v40, 0.0 }
 0x127   :  { %88 = vadd.xlane.f32.xlu1 %v87_v41 }
 0x19a   :  { %v89_v43 = vpop.xlane.xlu1 %88 }
 0x19b   :  { %v91_v44 = vmul.f32 %v90_v42, %v89_v43 }
 0x19d   :  { %v93_v45 = vmul.f32 0.1, %v91_v44 }
 0x19f   :  { %v94_v46 = vadd.f32 0.9, %v93_v45 }
 0x1a1   :  { %v96_v47 = vadd.f32 1e-05, %v94_v46 }
 0x1a3   :  { %170 = vrsqrt.f32 %v96_v47  ;;  %vm103_vm3 = vweird.f32 %v96_v47 }
 0x1a9   :  { %v171_v48 = vpop.eup %170 }
 0x1aa   :  { %v98_v49 = vmul.f32 %v171_v48, %v96_v47  ;;  %vm104_vm2 = vweird.f32 %v171_v48 }
 0x1ab   :  { %vm105_vm4 = vmor %vm103_vm3, %vm104_vm2 }
 0x1ac   :  { %v99_v50 = vmul.f32 %v171_v48, %v98_v49 }
 0x1ae   :  { %v100_v51 = vmul.f32 0.5, %v99_v50 }
 0x1b0   :  { %v101_v52 = vsub.f32 1.5, %v100_v51 }
 0x1b2   :  { %v102_v54 = vmul.f32 %v171_v48, %v101_v52 }
 0x1b4   :  { %v106_v55 = vsel %vm105_vm4, %v171_v48, %v102_v54 }
 0x1b5   :  { %v107_v57 = vmul.f32 %v106_v55, %v95_v53 }
 0x1b7   :  { %113 = vperm.xlu1 %168, %v107_v57   ;;  %v109_v59 = vmul.f32 %v107_v57, %v92_v56 }
 0x1b9   :  { %v110_v60 = vsub.f32 %v108_v58, %v109_v59 }
 0x1bb   :  { %126 = vperm.xlu2 %169, %v110_v60  }
 0x215   :  { %v127_v61 = vpop.permute.xlu2 %126 }
 0x216   :  { %v129_v62 = vmul.f32 %v127_v61, %v281_v10 }
 0x218   :  { %v130_v63 = vsel %vm54_vm1, %v129_v62, 0.0 }
 0x219   :  { %v131_v2 = vrot.slane %v130_v63, 4 }
 0x21b   :  { %v132_v3 = vadd.f32 %v131_v2, %v130_v63 }
 0x21d   :  { %v133_v7 = vrot.slane %v132_v3, 2 }
 0x21f   :  { %v134_v11 = vadd.f32 %v133_v7, %v132_v3 }
 0x221   :  { %v135_v14 = vrot.slane %v134_v11, 1 }
 0x223   :  { %v136_v17 = vadd.f32 %v135_v14, %v134_v11 }
 0x229   :  { %v114_v4 = vpop.permute.xlu1 %113 }
 0x22a   :  { %v116_v5 = vmul.f32 %v114_v4, %v281_v10 }
 0x22c   :  { %v117_v6 = vsel %vm54_vm1, %v116_v5, 0.0 }
 0x22d   :  { %v118_v8 = vrot.slane %v117_v6, 4 }
 0x22f   :  { %v119_v9 = vadd.f32 %v118_v8, %v117_v6 }
 0x231   :  { %v120_v12 = vrot.slane %v119_v9, 2 }
 0x233   :  { %v121_v13 = vadd.f32 %v120_v12, %v119_v9 }
 0x235   :  { %v122_v15 = vrot.slane %v121_v13, 1 }
 0x237   :  { %v123_v16 = vadd.f32 %v122_v15, %v121_v13 }
 0x239   :  { %v137_v18 = vmul.f32 %v123_v16, %v270_v0  ;;  %v138_v19 = vmul.f32 %v123_v16, %v272_v1 }
 0x23b   :  { %v139_v10 = vadd.f32 %v137_v18, %v136_v17  ;;  %v140_v20 = vadd.f32 %v138_v19, %v136_v17 }
 0x23d   :  { %141 = vst.msk [vmem:[#allocation5] sm:$0xff] %vm43_vm0, %v139_v10 }
 0x23e   :  { %142 = vst.msk [vmem:[#allocation5 + $0x8] sm:$0xff] %vm43_vm0, %v140_v20 }
 0x23f   :  { %155 = dma.vmem_to_hbm [thread:$0]  %s148_s2, 256, %s150_s12, [#allocation4], %s225_s26, %s225_s26, %s226_s27  }
 0x240   :  { %222 = dma.done.wait [#allocation4], 256  }
 0x241   :  { %223 = vsyncadd [#allocation4], 4294967040 }
 0x242   :  { %160 = vsyncpa [#allocation3], 1 }
 0x243   :  { %161 = vsyncpa [#allocation4], 1 }

</bundles_post_ra>
